<compile_context>
chip_gen: v7x
topology: tpu7x:2x2x1
jax: 0.10.0
libtpu: 0.0.40
codegen_flags: <defaults>
</compile_context>

<pallas_src>
import functools
import numpy as np
import jax
import jax.numpy as jnp
from jax.experimental import pallas as pl
from jax.experimental.pallas import tpu as pltpu


def _round_up(x, m):
    return ((x + m - 1) // m) * m


def _non_control_indices(nxny, control_indices):
    mask = np.ones((nxny,), dtype=bool)
    mask[np.asarray(control_indices, dtype=np.int64)] = False
    return np.nonzero(mask)[0]


def _pick_tile_b(Bp):
    """Largest multiple-of-8 divisor of Bp that is <= 1024, with >= 2 grid steps
    whenever Bp >= 16 (keeps the second v7x TensorCore busy)."""
    assert Bp % 8 == 0
    cap = 1024
    if Bp >= 16:
        cap = min(cap, Bp // 2)
    best = 8
    t = 8
    while t <= min(cap, Bp):
        if Bp % t == 0:
            best = t
        t += 8
    return best


@functools.lru_cache(maxsize=1)
def _buffered_const_supported():
    """Probe (once) whether BlockSpec(pipeline_mode=pl.Buffered(1)) compiles here."""
    if not hasattr(pl, "Buffered"):
        return False
    try:
        def k(a_ref, o_ref):
            o_ref[...] = a_ref[...] * 2.0
        fn = pl.pallas_call(
            k,
            out_shape=jax.ShapeDtypeStruct((16, 128), jnp.float32),
            grid=(2,),
            in_specs=[pl.BlockSpec((8, 128), lambda i: (0, 0),
                                   pipeline_mode=pl.Buffered(buffer_count=1))],
            out_specs=pl.BlockSpec((8, 128), lambda i: (i, 0)),
        )
        jax.jit(fn).lower(jnp.zeros((8, 128), jnp.float32)).compile()
        return True
    except Exception:
        return False


# ----------------------------------------------------------------------------- kernel
def _encoder_kernel(x_ref, cmask_ref, w1_ref, b1_ref, w2_ref, b2_ref,
                    w3_ref, b3_ref, w4_ref, b4_ref, o_ref):
    """Fused: (gather folded into W1) -> 4x Linear + 3x ReLU -> (scatter folded into
    W4/b4) -> + x * control_mask.  One lane-dense output store per batch tile.
    Weights may be bf16 (casts only at the dot boundary, f32 accumulation)."""
    wdt = w1_ref.dtype
    h = jnp.dot(x_ref[...].astype(wdt), w1_ref[...],
                preferred_element_type=jnp.float32) + b1_ref[...]
    h = jnp.maximum(h, 0.0)
    h = jnp.dot(h.astype(wdt), w2_ref[...],
                preferred_element_type=jnp.float32) + b2_ref[...]
    h = jnp.maximum(h, 0.0)
    h = jnp.dot(h.astype(wdt), w3_ref[...],
                preferred_element_type=jnp.float32) + b3_ref[...]
    h = jnp.maximum(h, 0.0)
    y = jnp.dot(h.astype(wdt), w4_ref[...],
                preferred_element_type=jnp.float32) + b4_ref[...]
    # Control columns of W4/b4 are exactly zero -> y == 0 there; add the passthrough.
    # x is re-loaded here (not kept live across the MLP) to reduce vreg pressure.
    o_ref[...] = (y + x_ref[...] * cmask_ref[...]).astype(o_ref.dtype)


def _encoder_pallas(x_pad, cmask, w1e, b1e, w2e, b2e, w3e, b3e, w4e, b4e, *,
                    tile_b, single_buffer_consts):
    Bp, Dp = x_pad.shape
    Hp = w1e.shape[1]
    grid = (Bp // tile_b,)

    row_spec = pl.BlockSpec((tile_b, Dp), lambda i: (i, 0))
    if single_buffer_consts:
        def const(shape):
            return pl.BlockSpec(shape, lambda i: (0, 0),
                                pipeline_mode=pl.Buffered(buffer_count=1))
    else:
        def const(shape):
            return pl.BlockSpec(shape, lambda i: (0, 0))

    # VMEM budget: resident constants (x1 or x2 buffers) + double-buffered x/y tiles,
    # with 25% + 2 MiB headroom, floored at 16 MiB and capped at 64 MiB (valid on v7x).
    nbuf = 1 if single_buffer_consts else 2
    const_bytes = sum(int(a.size) * a.dtype.itemsize
                      for a in (cmask, w1e, b1e, w2e, b2e, w3e, b3e, w4e, b4e)) * nbuf
    io_bytes = 2 * 2 * tile_b * Dp * 4
    vmem_limit = int(min(64 << 20,
                         max(16 << 20, int(1.25 * (const_bytes + io_bytes)) + (2 << 20))))

    flops = 2 * Bp * (Dp * Hp + 2 * Hp * Hp + Hp * Dp)
    bytes_accessed = 2 * Bp * Dp * 4 + const_bytes // nbuf
    cost = pl.CostEstimate(flops=flops, transcendentals=0,
                           bytes_accessed=int(bytes_accessed))

    return pl.pallas_call(
        _encoder_kernel,
        out_shape=jax.ShapeDtypeStruct((Bp, Dp), jnp.float32),
        grid=grid,
        in_specs=[
            row_spec,                       # x tile (streams)
            const(cmask.shape),             # control mask (VMEM-resident)
            const(w1e.shape), const(b1e.shape),
            const(w2e.shape), const(b2e.shape),
            const(w3e.shape), const(b3e.shape),
            const(w4e.shape), const(b4e.shape),
        ],
        out_specs=row_spec,
        compiler_params=pltpu.CompilerParams(
            dimension_semantics=("parallel",),      # batch axis -> 2 TCs on v7x
            vmem_limit_bytes=vmem_limit),
        cost_estimate=cost,
    )(x_pad, cmask, w1e, b1e, w2e, b2e, w3e, b3e, w4e, b4e)


# --------------------------------------------------------------------------- wrappers
def _fold_params(params, nxny, P, control_indices, compute_dtype):
    """Fold the static gather/scatter and 128-padding into zero-padded weights.
    All padding is exact zeros, so the result is unchanged (bf16 zero is exact)."""
    w1, b1, w2, b2, w3, b3, w4, b4 = params
    H = int(w1.shape[1])
    Hp = _round_up(max(H, 128), 128)
    Dp = _round_up(max(nxny, P), 128)

    control_np = np.asarray(control_indices, dtype=np.int64)
    nc_idx = _non_control_indices(nxny, control_np)

    # W1: rows at non-control input positions, zero rows elsewhere (gather folded in).
    w1e = jnp.zeros((Dp, Hp), jnp.float32).at[nc_idx, :H].set(w1).astype(compute_dtype)
    w2e = jnp.zeros((Hp, Hp), jnp.float32).at[:H, :H].set(w2).astype(compute_dtype)
    w3e = jnp.zeros((Hp, Hp), jnp.float32).at[:H, :H].set(w3).astype(compute_dtype)
    # W4: columns at non-control output positions, zero columns elsewhere (scatter).
    w4e = jnp.zeros((Hp, Dp), jnp.float32).at[:H, nc_idx].set(w4).astype(compute_dtype)
    # Biases stay f32 (added to the f32 accumulator on the VPU).
    b1e = jnp.zeros((1, Hp), jnp.float32).at[:, :H].set(b1)
    b2e = jnp.zeros((1, Hp), jnp.float32).at[:, :H].set(b2)
    b3e = jnp.zeros((1, Hp), jnp.float32).at[:, :H].set(b3)
    b4e = jnp.zeros((1, Dp), jnp.float32).at[:, nc_idx].set(b4)

    cmask_np = np.zeros((1, Dp), np.float32)
    cmask_np[0, control_np] = 1.0
    cmask = jnp.asarray(cmask_np)

    return (cmask, w1e, b1e, w2e, b2e, w3e, b3e, w4e, b4e), Dp


def _encoder_apply(x, folded, *, nxny, P, Dp, single_buffer_consts):
    x = x.astype(jnp.float32)
    B = x.shape[0]
    Bp = _round_up(B, 8)
    tile_b = _pick_tile_b(Bp)

    if B == Bp and nxny == Dp:
        x_in = x                                   # no pad pass needed
    else:
        x_in = jnp.pad(x, ((0, Bp - B), (0, Dp - nxny)))

    y_pad = _encoder_pallas(x_in, *folded, tile_b=tile_b,
                            single_buffer_consts=single_buffer_consts)

    if B == Bp and P == Dp:
        return y_pad                               # no slice pass needed
    return y_pad[:B, :P]


def make_encoder(params, nxny, M, P, control_indices, *, compute_dtype=jnp.float32):
    """Fold/pad weights once (eagerly), return a jitted forward: x (B, nxny) -> (B, P)."""
    control_np = np.asarray(control_indices, dtype=np.int64)
    # The original's boolean-mask scatter y[:, mask] with a length-nxny mask
    # implicitly requires P == nxny (and control indices valid for both).
    assert P == nxny, "Encoder boolean-mask scatter requires P == nxny"
    assert control_np.shape[0] == M

    folded, Dp = _fold_params(params, nxny, P, control_np, compute_dtype)
    folded = tuple(jax.block_until_ready(a) for a in folded)   # folded ONCE, cached
    single_buffer = _buffered_const_supported()

    @jax.jit
    def fwd(x, folded_args):
        return _encoder_apply(x, folded_args, nxny=nxny, P=P, Dp=Dp,
                              single_buffer_consts=single_buffer)

    def run(x):
        return fwd(x, folded)

    return run


def encoder_forward_ref(x, params, nxny, M, P, control_indices):
    """Pure-JAX reference (mirrors the PyTorch module)."""
    w1, b1, w2, b2, w3, b3, w4, b4 = params
    control_np = np.asarray(control_indices, dtype=np.int64)
    nc_idx = _non_control_indices(nxny, control_np)

    h = jnp.maximum(x[:, nc_idx] @ w1 + b1, 0.0)
    h = jnp.maximum(h @ w2 + b2, 0.0)
    h = jnp.maximum(h @ w3 + b3, 0.0)
    y_nc = h @ w4 + b4

    y = jnp.zeros((x.shape[0], P), jnp.float32)
    y = y.at[:, control_np].set(x[:, control_np])
    y = y.at[:, nc_idx].set(y_nc)
    return y


def make_encoder_params(key, nxny, M, hidden_dim, P):
    """Deterministic synthetic parameters matching the PyTorch module's shapes."""
    d_in, d_out = nxny - M, P - M
    dims = [(d_in, hidden_dim), (hidden_dim, hidden_dim),
            (hidden_dim, hidden_dim), (hidden_dim, d_out)]
    params = []
    for (fan_in, fan_out) in dims:
        key, kw, kb = jax.random.split(key, 3)
        bound = 1.0 / np.sqrt(fan_in)
        w = jax.random.uniform(kw, (fan_in, fan_out), jnp.float32, -bound, bound)
        b = jax.random.uniform(kb, (1, fan_out), jnp.float32, -bound, bound)
        params += [w, b]
    return tuple(params)


if __name__ == "__main__":
    # Small shapes consistent with the module (P == nxny so the boolean scatter is valid).
    batch = 16
    nxny = 64
    P = 64
    M = 8
    hidden_dim = 32
    control_indices = np.array([0, 5, 11, 20, 33, 40, 55, 63], dtype=np.int64)

    key = jax.random.PRNGKey(0)
    key, kx = jax.random.split(key)
    x = jax.random.normal(kx, (batch, nxny), jnp.float32)
    params = make_encoder_params(key, nxny, M, hidden_dim, P)

    y_ref = jax.block_until_ready(
        encoder_forward_ref(x, params, nxny, M, P, control_indices))

    # f32 path (default): matches the PyTorch module within MXU f32 tolerance.
    enc_f32 = make_encoder(params, nxny, M, P, control_indices,
                           compute_dtype=jnp.float32)
    y = jax.block_until_ready(enc_f32(x))
    assert y.shape == (batch, P)
    assert np.allclose(np.asarray(y), np.asarray(y_ref), rtol=1e-4, atol=1e-4), (
        np.max(np.abs(np.asarray(y) - np.asarray(y_ref))))

    # bf16 weight path (f32 accumulation): looser tolerance, exact control passthrough.
    enc_bf16 = make_encoder(params, nxny, M, P, control_indices,
                            compute_dtype=jnp.bfloat16)
    y_bf = jax.block_until_ready(enc_bf16(x))
    assert y_bf.shape == (batch, P)
    assert np.allclose(np.asarray(y_bf), np.asarray(y_ref), rtol=5e-2, atol=5e-2), (
        np.max(np.abs(np.asarray(y_bf) - np.asarray(y_ref))))
    assert np.allclose(np.asarray(y_bf)[:, control_indices],
                       np.asarray(x)[:, control_indices], rtol=0.0, atol=1e-6)

    print("KERNEL_OK")
</pallas_src>

<mosaic_0001>
module attributes {stable_mosaic.version = 11 : i64} {
  func.func @_encoder_kernel(%arg0: i32, %arg1: memref<8x128xf32, #tpu.memory_space<vmem>>, %arg2: memref<1x128xf32, #tpu.memory_space<vmem>>, %arg3: memref<128x128xf32, #tpu.memory_space<vmem>>, %arg4: memref<1x128xf32, #tpu.memory_space<vmem>>, %arg5: memref<128x128xf32, #tpu.memory_space<vmem>>, %arg6: memref<1x128xf32, #tpu.memory_space<vmem>>, %arg7: memref<128x128xf32, #tpu.memory_space<vmem>>, %arg8: memref<1x128xf32, #tpu.memory_space<vmem>>, %arg9: memref<128x128xf32, #tpu.memory_space<vmem>>, %arg10: memref<1x128xf32, #tpu.memory_space<vmem>>, %arg11: memref<8x128xf32, #tpu.memory_space<vmem>>) attributes {dimension_semantics = [#tpu.dimension_semantics<parallel>], iteration_bounds = array<i64: 2>, scalar_prefetch = 0 : i64, scratch_operands = 0 : i64, tpu.core_type = #tpu.core_type<tc>, window_params = [{transform_indices = @transform_0, window_bounds = array<i64: 8, 128>}, {pipeline_mode = #tpu.pipeline_mode<synchronous>, transform_indices = @transform_1, window_bounds = array<i64: 1, 128>}, {pipeline_mode = #tpu.pipeline_mode<synchronous>, transform_indices = @transform_2, window_bounds = array<i64: 128, 128>}, {pipeline_mode = #tpu.pipeline_mode<synchronous>, transform_indices = @transform_3, window_bounds = array<i64: 1, 128>}, {pipeline_mode = #tpu.pipeline_mode<synchronous>, transform_indices = @transform_4, window_bounds = array<i64: 128, 128>}, {pipeline_mode = #tpu.pipeline_mode<synchronous>, transform_indices = @transform_5, window_bounds = array<i64: 1, 128>}, {pipeline_mode = #tpu.pipeline_mode<synchronous>, transform_indices = @transform_6, window_bounds = array<i64: 128, 128>}, {pipeline_mode = #tpu.pipeline_mode<synchronous>, transform_indices = @transform_7, window_bounds = array<i64: 1, 128>}, {pipeline_mode = #tpu.pipeline_mode<synchronous>, transform_indices = @transform_8, window_bounds = array<i64: 128, 128>}, {pipeline_mode = #tpu.pipeline_mode<synchronous>, transform_indices = @transform_9, window_bounds = array<i64: 1, 128>}, {transform_indices = @transform_10, window_bounds = array<i64: 8, 128>}]} {
    %c0 = arith.constant 0 : index
    %c0_0 = arith.constant 0 : index
    %0 = vector.load %arg1[%c0, %c0_0] : memref<8x128xf32, #tpu.memory_space<vmem>>, vector<8x128xf32>
    %c0_1 = arith.constant 0 : index
    %c0_2 = arith.constant 0 : index
    %1 = vector.load %arg3[%c0_1, %c0_2] : memref<128x128xf32, #tpu.memory_space<vmem>>, vector<128x128xf32>
    %cst = arith.constant dense<0.000000e+00> : vector<8x128xf32>
    %2 = tpu.matmul %0, %1, %cst {dimension_numbers = #tpu.dot_dimension_numbers<[1], [0], [0], [1], [0, 0, 1, 1], [], []>} : vector<8x128xf32>, vector<128x128xf32>, vector<8x128xf32> -> vector<8x128xf32>
    %c0_3 = arith.constant 0 : index
    %c0_4 = arith.constant 0 : index
    %3 = vector.load %arg4[%c0_3, %c0_4] : memref<1x128xf32, #tpu.memory_space<vmem>>, vector<1x128xf32>
    %4 = vector.broadcast %3 : vector<1x128xf32> to vector<8x128xf32>
    %5 = arith.addf %2, %4 : vector<8x128xf32>
    %cst_5 = arith.constant 0.000000e+00 : f32
    %6 = vector.broadcast %cst_5 : f32 to vector<8x128xf32>
    %7 = arith.maximumf %5, %6 : vector<8x128xf32>
    %c0_6 = arith.constant 0 : index
    %c0_7 = arith.constant 0 : index
    %8 = vector.load %arg5[%c0_6, %c0_7] : memref<128x128xf32, #tpu.memory_space<vmem>>, vector<128x128xf32>
    %cst_8 = arith.constant dense<0.000000e+00> : vector<8x128xf32>
    %9 = tpu.matmul %7, %8, %cst_8 {dimension_numbers = #tpu.dot_dimension_numbers<[1], [0], [0], [1], [0, 0, 1, 1], [], []>} : vector<8x128xf32>, vector<128x128xf32>, vector<8x128xf32> -> vector<8x128xf32>
    %c0_9 = arith.constant 0 : index
    %c0_10 = arith.constant 0 : index
    %10 = vector.load %arg6[%c0_9, %c0_10] : memref<1x128xf32, #tpu.memory_space<vmem>>, vector<1x128xf32>
    %11 = vector.broadcast %10 : vector<1x128xf32> to vector<8x128xf32>
    %12 = arith.addf %9, %11 : vector<8x128xf32>
    %cst_11 = arith.constant 0.000000e+00 : f32
    %13 = vector.broadcast %cst_11 : f32 to vector<8x128xf32>
    %14 = arith.maximumf %12, %13 : vector<8x128xf32>
    %c0_12 = arith.constant 0 : index
    %c0_13 = arith.constant 0 : index
    %15 = vector.load %arg7[%c0_12, %c0_13] : memref<128x128xf32, #tpu.memory_space<vmem>>, vector<128x128xf32>
    %cst_14 = arith.constant dense<0.000000e+00> : vector<8x128xf32>
    %16 = tpu.matmul %14, %15, %cst_14 {dimension_numbers = #tpu.dot_dimension_numbers<[1], [0], [0], [1], [0, 0, 1, 1], [], []>} : vector<8x128xf32>, vector<128x128xf32>, vector<8x128xf32> -> vector<8x128xf32>
    %c0_15 = arith.constant 0 : index
    %c0_16 = arith.constant 0 : index
    %17 = vector.load %arg8[%c0_15, %c0_16] : memref<1x128xf32, #tpu.memory_space<vmem>>, vector<1x128xf32>
    %18 = vector.broadcast %17 : vector<1x128xf32> to vector<8x128xf32>
    %19 = arith.addf %16, %18 : vector<8x128xf32>
    %cst_17 = arith.constant 0.000000e+00 : f32
    %20 = vector.broadcast %cst_17 : f32 to vector<8x128xf32>
    %21 = arith.maximumf %19, %20 : vector<8x128xf32>
    %c0_18 = arith.constant 0 : index
    %c0_19 = arith.constant 0 : index
    %22 = vector.load %arg9[%c0_18, %c0_19] : memref<128x128xf32, #tpu.memory_space<vmem>>, vector<128x128xf32>
    %cst_20 = arith.constant dense<0.000000e+00> : vector<8x128xf32>
    %23 = tpu.matmul %21, %22, %cst_20 {dimension_numbers = #tpu.dot_dimension_numbers<[1], [0], [0], [1], [0, 0, 1, 1], [], []>} : vector<8x128xf32>, vector<128x128xf32>, vector<8x128xf32> -> vector<8x128xf32>
    %c0_21 = arith.constant 0 : index
    %c0_22 = arith.constant 0 : index
    %24 = vector.load %arg10[%c0_21, %c0_22] : memref<1x128xf32, #tpu.memory_space<vmem>>, vector<1x128xf32>
    %25 = vector.broadcast %24 : vector<1x128xf32> to vector<8x128xf32>
    %26 = arith.addf %23, %25 : vector<8x128xf32>
    %c0_23 = arith.constant 0 : index
    %c0_24 = arith.constant 0 : index
    %27 = vector.load %arg1[%c0_23, %c0_24] : memref<8x128xf32, #tpu.memory_space<vmem>>, vector<8x128xf32>
    %c0_25 = arith.constant 0 : index
    %c0_26 = arith.constant 0 : index
    %28 = vector.load %arg2[%c0_25, %c0_26] : memref<1x128xf32, #tpu.memory_space<vmem>>, vector<1x128xf32>
    %29 = vector.broadcast %28 : vector<1x128xf32> to vector<8x128xf32>
    %30 = arith.mulf %27, %29 : vector<8x128xf32>
    %31 = arith.addf %26, %30 : vector<8x128xf32>
    %c0_27 = arith.constant 0 : index
    %c0_28 = arith.constant 0 : index
    %32 = vector.load %arg11[%c0_27, %c0_28] : memref<8x128xf32, #tpu.memory_space<vmem>>, vector<8x128xf32>
    tpu.vector_store %arg11[%c0_27, %c0_28], %31 {strides = array<i32>} : memref<8x128xf32, #tpu.memory_space<vmem>>, vector<8x128xf32>,
    return
  }
  func.func @transform_0(%arg0: i32) -> (i32, i32) {
    %c0_i32 = arith.constant 0 : i32
    %c0_i32_0 = arith.constant 0 : i32
    return %arg0, %c0_i32 : i32, i32
  }
  func.func @transform_1(%arg0: i32) -> (i32, i32) {
    %c0_i32 = arith.constant 0 : i32
    %c0_i32_0 = arith.constant 0 : i32
    %c0_i32_1 = arith.constant 0 : i32
    return %c0_i32, %c0_i32_0 : i32, i32
  }
  func.func @transform_2(%arg0: i32) -> (i32, i32) {
    %c0_i32 = arith.constant 0 : i32
    %c0_i32_0 = arith.constant 0 : i32
    %c0_i32_1 = arith.constant 0 : i32
    return %c0_i32, %c0_i32_0 : i32, i32
  }
  func.func @transform_3(%arg0: i32) -> (i32, i32) {
    %c0_i32 = arith.constant 0 : i32
    %c0_i32_0 = arith.constant 0 : i32
    %c0_i32_1 = arith.constant 0 : i32
    return %c0_i32, %c0_i32_0 : i32, i32
  }
  func.func @transform_4(%arg0: i32) -> (i32, i32) {
    %c0_i32 = arith.constant 0 : i32
    %c0_i32_0 = arith.constant 0 : i32
    %c0_i32_1 = arith.constant 0 : i32
    return %c0_i32, %c0_i32_0 : i32, i32
  }
  func.func @transform_5(%arg0: i32) -> (i32, i32) {
    %c0_i32 = arith.constant 0 : i32
    %c0_i32_0 = arith.constant 0 : i32
    %c0_i32_1 = arith.constant 0 : i32
    return %c0_i32, %c0_i32_0 : i32, i32
  }
  func.func @transform_6(%arg0: i32) -> (i32, i32) {
    %c0_i32 = arith.constant 0 : i32
    %c0_i32_0 = arith.constant 0 : i32
    %c0_i32_1 = arith.constant 0 : i32
    return %c0_i32, %c0_i32_0 : i32, i32
  }
  func.func @transform_7(%arg0: i32) -> (i32, i32) {
    %c0_i32 = arith.constant 0 : i32
    %c0_i32_0 = arith.constant 0 : i32
    %c0_i32_1 = arith.constant 0 : i32
    return %c0_i32, %c0_i32_0 : i32, i32
  }
  func.func @transform_8(%arg0: i32) -> (i32, i32) {
    %c0_i32 = arith.constant 0 : i32
    %c0_i32_0 = arith.constant 0 : i32
    %c0_i32_1 = arith.constant 0 : i32
    return %c0_i32, %c0_i32_0 : i32, i32
  }
  func.func @transform_9(%arg0: i32) -> (i32, i32) {
    %c0_i32 = arith.constant 0 : i32
    %c0_i32_0 = arith.constant 0 : i32
    %c0_i32_1 = arith.constant 0 : i32
    return %c0_i32, %c0_i32_0 : i32, i32
  }
  func.func @transform_10(%arg0: i32) -> (i32, i32) {
    %c0_i32 = arith.constant 0 : i32
    %c0_i32_0 = arith.constant 0 : i32
    return %arg0, %c0_i32 : i32, i32
  }
}

</mosaic_0001>

<bundles_post_ra>
// kernel: fwd.1
= control target key start
LH: loop header
LB: loop body
LE: loop exit
PB: predicated region body
PF: predicated region fallthrough
CT: control target
= control target key end

     0   :  { %15 = vsyncpa [#allocation3], 0  ;;  %s1872_s0 = inlined_call_operand.vmem [shape: f32[16,128], index: 0, kind: input, shape index: {}]   ;;  %s1873_s1 = inlined_call_operand.vmem [shape: f32[1,128], index: 1, kind: input, shape index: {}]   ;;  %s1874_s2 = inlined_call_operand.hbm [shape: f32[128,128], index: 2, kind: input, shape index: {}]   ;;  %s1875_s3 = inlined_call_operand.vmem [shape: f32[1,128], index: 3, kind: input, shape index: {}]   ;;  %s1876_s4 = inlined_call_operand.hbm [shape: f32[128,128], index: 4, kind: input, shape index: {}]   ;;  %s1877_s5 = inlined_call_operand.vmem [shape: f32[1,128], index: 5, kind: input, shape index: {}]   ;;  %s1878_s6 = inlined_call_operand.hbm [shape: f32[128,128], index: 6, kind: input, shape index: {}]   ;;  %s1879_s7 = inlined_call_operand.vmem [shape: f32[1,128], index: 7, kind: input, shape index: {}]   ;;  %s1880_s8 = inlined_call_operand.hbm [shape: f32[128,128], index: 8, kind: input, shape index: {}]   ;;  %s1881_s9 = inlined_call_operand.vmem [shape: f32[1,128], index: 9, kind: input, shape index: {}]   ;;  %s1882_s10 = inlined_call_operand.hbm [shape: f32[16,128], index: 10, kind: output, shape index: {}]  }
   0x1   :  { %16 = vsyncpa [#allocation6], 0 }
   0x2   :  { %17 = vsyncpa [#allocation9], 0 }
   0x3   :  { %18 = vsyncpa [#allocation4], 0 }
   0x4   :  { %20 = vsyncpa [#allocation4 + $0x1], 0  ;;  %s1579_s13 = smov 0   ;;  %s1581_s14 = smov 0  }
   0x5   :  { %s1583_s15 = smov 0   ;;  %s1585_s16 = smov 0  }
   0x6 LB: > { %1892 = sst [smem:[#allocation15_spill]] %s1500_s13  ;;  %s1600_s17 = sadd.s32 4294967295, %s1512_s16   ;;  %s1512_s16 = sphi %s1585_s16, %s1915_s16   ;;  %s1508_s15 = sphi %s1583_s15, %s1917_s15   ;;  %s1504_s14 = sphi %s1581_s14, %s1919_s14   ;;  %s1500_s13 = sphi %s1579_s13, %s1918_s13  }
   0x7   : > { %1893 = sst [smem:[#allocation16_spill]] %s1508_s15  ;;  %s914_s18 = sadd.s32 4294967294, %s1512_s16  }
   0x8   : > { %1894 = sst [smem:[#allocation17_spill]] %s1512_s16  ;;  %s1604_s19 = sadd.s32 1, %s1512_s16  }
   0x9   : > { %1895 = sst [smem:[#allocation18_spill]] %s1604_s19  ;;  %s248_s20 = sadd.s32 1, %s1508_s15 }
   0xa   : > { %s245_s21 = ssub.s32 %s1512_s16, %s1604_s19  ;;  %p258_p0 = scmp.ne.s32.totalorder %s1508_s15, %s1504_s14 }
   0xb   : > { %p246_p1 = scmp.eq.s32.totalorder %s245_s21, 0  ;;  %p259_p2 = scmp.eq.s32.totalorder %s1600_s17, 1 }
   0xc   : > { %p264_p3 = scmp.ne.s32.totalorder %s1504_s14, %s1500_s13  ;;  %p265_p4 = scmp.eq.s32.totalorder %s914_s18, 1 }
   0xd   : > { %s1615_s22 = scalar_select %p246_p1, %s1508_s15, %s248_s20  }
   0xe   : > { %p1617_p5 = por %p259_p2, %p258_p0  ;;  %p1621_p6 = por %p265_p4, %p264_p3 }
   0xf   : > { %1896 = sst [smem:[#allocation19_spill]] %s1615_s22  ;;  %p915_p7 = scmp.ge.s32.totalorder %s1512_s16, 1 }
  0x10   : > { %s1897_s23 = scalar_select %p1617_p5, 1, 0 }
  0x11   : > { %s1898_s24 = scalar_select %p1621_p6, 1, 0 }
  0x12   : > { %p272_p8 = scmp.lt.s32.totalorder %s1512_s16, 3  ;;  %p1884_p9 = scmp.eq.s32.totalorder %s1600_s17, 0 }
  0x13   : > { %1899 = sst [smem:[#allocation20_spill]] %s1898_s24  ;;  %s1514_s26 = smov [#allocation5]  }
  0x14   : > { %p1628_p10 = pnand %p915_p7, %p272_p8  ;;  %s303_s27 = sshll.u32 %s1514_s26, 4  ;;  %s1634_s27 = int_to_ptr.vmem [resolvable:$true] %s303_s27 }
  0x15   : > { %s1515_s29 = smov [#allocation2]   ;;  %s1516_s11 = smov [#allocation7]  }
  0x16   : > { %s1900_s25 = scalar_select %p1628_p10, 1, 0 }
  0x17   : > { %p1259_p11 = pneg %p1628_p10  ;;  %s287_s30 = sshll.u32 %s1515_s29, 4  ;;  %s1642_s30 = int_to_ptr.vmem [resolvable:$true] %s287_s30 }
  0x18   : > { %s1644_s12 = sshll.u32 %s1516_s11, 4  ;;  %s1326_s21 = scalar_lea.hbm %s1876_s4, 2048  ;;  %s320_s12 = int_to_ptr.vmem [resolvable:$true] %s1644_s12 }
  0x19   : > { %p1638_p12 = pnand %p1884_p9, %p1259_p11  ;;  %p1327_p13 = scmp.ne.s32.totalorder %s1876_s4, %s1326_s21 }
  0x1a   : > { %p1333_p3 = scmp.lt.u32.totalorder %s1326_s21, %s1876_s4 }
  0x1b   : > { %p1654_p0 = pneg %p1638_p12 }
  0x1d   : > { %p1329_p1 = pnand %p1654_p0, %p1327_p13 }
  0x1f   : > { %p1330_p2 = pneg %p1329_p1 }
  0x21   : > { %p1335_p4 = pnand %p1333_p3, %p1330_p2 }
  0x23   : > { %1338 = shalt.err (!%p1335_p4)
}
  0x24   : > { %s1339_s22 = scalar_lea.vmem %s1634_s27, 2048  ;;  %p1347_p9 = scmp.lt.s32.totalorder %s1634_s27, %s1634_s27 }
  0x25   : > { %p1340_p7 = scmp.ne.s32.totalorder %s1634_s27, %s1339_s22  ;;  %p1348_p6 = scmp.lt.s32.totalorder %s1339_s22, %s1339_s22 }
  0x27   : > { %p1342_p8 = pnand %p1340_p7, %p1654_p0  ;;  %p1349_p13 = por %p1348_p6, %p1347_p9 }
  0x29   : > { %p1343_p11 = pneg %p1342_p8 }
  0x2b   : > { %p1350_p1 = pnand %p1349_p13, %p1343_p11 }
  0x2d   : > { %1353 = shalt.err (!%p1350_p1)
}
  0x2e   : > { %s1517_s18 = smov 128   ;;  %s1518_s20 = smov 8  }
  0x2f   : > { %1265 = dma.hbm_to_vmem [thread:$0]  (!%p1638_p12), %s1876_s4, 2048, %s1634_s27, [#allocation6], %s1517_s18, %s1517_s18, %s1518_s20  }
  0x30   : > { %s1354_s22 = scalar_lea.hbm %s1874_s2, 2048 }
  0x31   : > { %p1355_p6 = scmp.ne.s32.totalorder %s1874_s2, %s1354_s22  ;;  %p1361_p3 = scmp.lt.u32.totalorder %s1354_s22, %s1874_s2 }
  0x33   : > { %p1357_p9 = pnand %p1355_p6, %p1654_p0 }
  0x35   : > { %p1358_p2 = pneg %p1357_p9 }
  0x37   : > { %p1363_p4 = pnand %p1361_p3, %p1358_p2 }
  0x39   : > { %1366 = shalt.err (!%p1363_p4)
}
  0x3a   : > { %s1367_s27 = scalar_lea.vmem %s1642_s30, 2048  ;;  %p1375_p13 = scmp.lt.s32.totalorder %s1642_s30, %s1642_s30 }
  0x3b   : > { %p1368_p7 = scmp.ne.s32.totalorder %s1642_s30, %s1367_s27  ;;  %p1376_p1 = scmp.lt.s32.totalorder %s1367_s27, %s1367_s27 }
  0x3d   : > { %p1370_p8 = pnand %p1368_p7, %p1654_p0  ;;  %p1377_p6 = por %p1376_p1, %p1375_p13 }
  0x3f   : > { %p1371_p11 = pneg %p1370_p8 }
  0x41   : > { %p1378_p9 = pnand %p1377_p6, %p1371_p11 }
  0x43   : > { %1381 = shalt.err (!%p1378_p9)
}
  0x44   : > { %1262 = dma.hbm_to_vmem [thread:$0]  (!%p1638_p12), %s1874_s2, 2048, %s1642_s30, [#allocation3], %s1517_s18, %s1517_s18, %s1518_s20  }
  0x45   : > { %s1382_s21 = scalar_lea.hbm %s1878_s6, 2048 }
  0x46   : > { %p1383_p2 = scmp.ne.s32.totalorder %s1878_s6, %s1382_s21  ;;  %p1389_p7 = scmp.lt.u32.totalorder %s1382_s21, %s1878_s6 }
  0x48   : > { %p1385_p3 = pnand %p1383_p2, %p1654_p0 }
  0x4a   : > { %p1386_p4 = pneg %p1385_p3 }
  0x4c   : > { %p1391_p8 = pnand %p1389_p7, %p1386_p4 }
  0x4e   : > { %1394 = shalt.err (!%p1391_p8)
}
  0x4f   : > { %s1395_s27 = scalar_lea.vmem %s320_s12, 2048  ;;  %p1403_p6 = scmp.lt.s32.totalorder %s320_s12, %s320_s12 }
  0x50   : > { %p1396_p11 = scmp.ne.s32.totalorder %s320_s12, %s1395_s27  ;;  %p1404_p9 = scmp.lt.s32.totalorder %s1395_s27, %s1395_s27 }
  0x52   : > { %p1398_p13 = pnand %p1396_p11, %p1654_p0  ;;  %p1405_p5 = por %p1404_p9, %p1403_p6 }
  0x54   : > { %p1399_p1 = pneg %p1398_p13 }
  0x56   : > { %p1406_p10 = pnand %p1405_p5, %p1399_p1 }
  0x58   : > { %1409 = shalt.err (!%p1406_p10)
}
  0x59   : > { %1268 = dma.hbm_to_vmem [thread:$0]  (!%p1638_p12), %s1878_s6, 2048, %s320_s12, [#allocation6], %s1517_s18, %s1517_s18, %s1518_s20  }
  0x5a   : > { %s1519_s16 = smov [#allocation8]   ;;  %s1410_s26 = scalar_lea.hbm %s1880_s8, 2048 }
  0x5b   : > { %s335_s19 = sshll.u32 %s1519_s16, 4  ;;  %p1411_p5 = scmp.ne.s32.totalorder %s1880_s8, %s1410_s26  ;;  %s336_s19 = int_to_ptr.vmem [resolvable:$true] %s335_s19 }
  0x5c   : > { %p1417_p3 = scmp.lt.u32.totalorder %s1410_s26, %s1880_s8 }
  0x5d   : > { %p1413_p10 = pnand %p1411_p5, %p1654_p0 }
  0x5f   : > { %p1414_p2 = pneg %p1413_p10 }
  0x61   : > { %p1419_p4 = pnand %p1417_p3, %p1414_p2 }
  0x63   : > { %1422 = shalt.err (!%p1419_p4)
}
  0x64   : > { %s1423_s12 = scalar_lea.vmem %s336_s19, 2048  ;;  %p1431_p13 = scmp.lt.s32.totalorder %s336_s19, %s336_s19 }
  0x65   : > { %p1424_p7 = scmp.ne.s32.totalorder %s336_s19, %s1423_s12  ;;  %p1432_p1 = scmp.lt.s32.totalorder %s1423_s12, %s1423_s12 }
  0x67   : > { %p1426_p8 = pnand %p1424_p7, %p1654_p0  ;;  %p1433_p6 = por %p1432_p1, %p1431_p13 }
  0x69   : > { %p1427_p11 = pneg %p1426_p8 }
  0x6b   : > { %p1434_p9 = pnand %p1433_p6, %p1427_p11 }
  0x6d   : > { %1437 = shalt.err (!%p1434_p9)
}
  0x6e   : > { %1271 = dma.hbm_to_vmem [thread:$0]  (!%p1638_p12), %s1880_s8, 2048, %s336_s19, [#allocation9], %s1517_s18, %s1517_s18, %s1518_s20  }
  0x6f   : > { %p1903_p5 = scmp.ne.s32.totalorder %s1900_s25, 0 }
  0x70   : > { %p1904_p0 = scmp.eq.s32.totalorder (!%p1903_p5), %s1600_s17, 0 }
  0x71   : > { %361 = sbr.rel (%p1903_p5) target bundleno = 1039 (0x40f), region = 60 }
  0x78   : > { %1483 = dma.done.wait (%p1904_p0), [#allocation3], 2048   ;;  %p1905_p10 = pmov %p1904_p0 }
  0x79   : > { %p1906_p2 = pmov %p1904_p0 }
  0x7a   : > { %1485 = vsyncadd (%p1905_p10), [#allocation3], 4294965248 }
  0x7b   : > { %1487 = dma.done.wait (%p1906_p2), [#allocation6], 4096   ;;  %p1907_p3 = pmov %p1904_p0 }
  0x7c   : > { %p1908_p4 = pmov %p1904_p0 }
  0x7d   : > { %1489 = vsyncadd (%p1907_p3), [#allocation6], 4294963200 }
  0x7e   : > { %1491 = dma.done.wait (%p1908_p4), [#allocation9], 2048   ;;  %p1909_p12 = pmov %p1904_p0 }
  0x7f   : > { %v1520_v0 = vmov 0.0|0.0   ;;  %vm1521_vm0 = vmmov 0   ;;  %v1522_v1 = vmov 0.0   ;;  %v415_v2 = vld [vmem:[#allocation2] sm:$0xff]  ;;  %v416_v3 = vld [vmem:[#allocation2 + $0x8] sm:$0xff]  ;;  %v417_v4 = vld [vmem:[#allocation2 + $0x10] sm:$0xff] }
  0x80   : > { %1493 = vsyncadd (%p1909_p12), [#allocation9], 4294965248  ;;  %1145 = vmatprep.subr.bf16.mxu0 %v1520_v0  ;;  %1037 = vmatprep.mubr.msk.f32.mxu0 %vm1521_vm0, %v1522_v1  ;;  %v1146_v5 = vpack.c.bf16 %v416_v3, %v415_v2  ;;  %v418_v6 = vld [vmem:[#allocation2 + $0x18] sm:$0xff]  ;;  %v419_v8 = vld [vmem:[#allocation2 + $0x20] sm:$0xff]  ;;  %p410_p7 = scmp.lt.s32.totalorder %s1600_s17, 1  ;;  %s407_s11 = sand.u32 1, %s1504_s14  }
  0x81   : > { %1169 = vmatprep.subr.bf16.mxu1 %v1520_v0  ;;  %1072 = vmatprep.mubr.msk.f32.mxu1 %vm1521_vm0, %v1522_v1  ;;  %v1149_v7 = vpack.c.bf16 %v418_v6, %v417_v4  ;;  %v420_v9 = vld [vmem:[#allocation2 + $0x28] sm:$0xff]  ;;  %v509_v10 = vld [vmem:[#allocation5] sm:$0xff]  ;;  %v511_v12 = vld [vmem:[#allocation5 + $0x10] sm:$0xff]  ;;  %s926_s22 = sshll.u32 %s407_s11, 3  ;;  %s801_s19 = scalar_lea.sflag [#allocation4], %s407_s11 }
  0x82   : > { %1147 = vmatpush3.bf16.msra.mxu0 %v1146_v5  ;;  %v510_v11 = vld [vmem:[#allocation5 + $0x8] sm:$0xff]  ;;  %v1152_v13 = vpack.c.bf16 %v420_v9, %v419_v8  ;;  %v512_v15 = vld [vmem:[#allocation5 + $0x18] sm:$0xff]  ;;  %v421_v16 = vld [vmem:[#allocation2 + $0x30] sm:$0xff]  ;;  %s411_s15 = scalar_select %p410_p7, %s1600_s17, 1 }
  0x83   : > { %1148 = vmatprep.subr.bf16.mxu0 %v1520_v0  ;;  %v1170_v14 = vpack.c.bf16 %v510_v11, %v509_v10  ;;  %v422_v17 = vld [vmem:[#allocation2 + $0x38] sm:$0xff]  ;;  %v1173_v18 = vpack.c.bf16 %v512_v15, %v511_v12  ;;  %v513_v19 = vld [vmem:[#allocation5 + $0x20] sm:$0xff]  ;;  %v514_v20 = vld [vmem:[#allocation5 + $0x28] sm:$0xff]  ;;  %p1910_p11 = scmp.ne.s32.totalorder %s1897_s23, 0 }
  0x84   : > { %v1155_v21 = vpack.c.bf16 %v422_v17, %v421_v16  ;;  %v423_v22 = vld [vmem:[#allocation2 + $0x40] sm:$0xff]  ;;  %v424_v23 = vld [vmem:[#allocation2 + $0x48] sm:$0xff]  ;;  %v1176_v24 = vpack.c.bf16 %v514_v20, %v513_v19  ;;  %v515_v25 = vld [vmem:[#allocation5 + $0x30] sm:$0xff]  ;;  %s927_s25 = sshll.u32 %s411_s15, 3  ;;  %s934_s15 = sshll.u32 %s1600_s17, 7 }
  0x85   : > { %1171 = vmatpush3.bf16.msra.mxu1 %v1170_v14  ;;  %v516_v26 = vld [vmem:[#allocation5 + $0x38] sm:$0xff]  ;;  %v1158_v27 = vpack.c.bf16 %v424_v23, %v423_v22  ;;  %v425_v28 = vld [vmem:[#allocation2 + $0x50] sm:$0xff]  ;;  %v517_v31 = vld [vmem:[#allocation5 + $0x40] sm:$0xff]  ;;  %s413_s20 = scalar_lea.vmem %s1872_s0, %s927_s25  ;;  %s409_s25 = scalar_lea.vmem [#allocation10], %s926_s22 }
  0x86   : > { %1150 = vmatpush3.bf16.msra.mxu0 %v1149_v7  ;;  %1172 = vmatprep.subr.bf16.mxu1 %v1520_v0  ;;  %v426_v29 = vld [vmem:[#allocation2 + $0x58] sm:$0xff]  ;;  %v1179_v30 = vpack.c.bf16 %v516_v26, %v515_v25  ;;  %v518_v32 = vld [vmem:[#allocation5 + $0x48] sm:$0xff]  ;;  %v427_v34 = vld [vmem:[#allocation2 + $0x60] sm:$0xff]  ;;  %s814_s28 = sshll.u32 %s409_s25, 4  ;;  %s1830_s16 = scalar_lea.hbm %s1882_s10, %s934_s15  ;;  %s1832_s28 = int_to_ptr.vmem [resolvable:$true] %s814_s28 }
  0x87   : > { %1151 = vmatprep.subr.bf16.mxu0 %v1520_v0  ;;  %v1161_v33 = vpack.c.bf16 %v426_v29, %v425_v28  ;;  %v428_v35 = vld [vmem:[#allocation2 + $0x68] sm:$0xff]  ;;  %v1182_v36 = vpack.c.bf16 %v518_v32, %v517_v31  ;;  %v519_v37 = vld [vmem:[#allocation5 + $0x50] sm:$0xff]  ;;  %v520_v38 = vld [vmem:[#allocation5 + $0x58] sm:$0xff]  ;;  %s1438_s24 = scalar_lea.vmem %s1832_s28, 128  ;;  %s1523_s17 = smov [#allocation10]  }
  0x88   : > { %v1164_v39 = vpack.c.bf16 %v428_v35, %v427_v34  ;;  %v429_v40 = vld [vmem:[#allocation2 + $0x70] sm:$0xff]  ;;  %v430_v41 = vld [vmem:[#allocation2 + $0x78] sm:$0xff]  ;;  %v1185_v42 = vpack.c.bf16 %v520_v38, %v519_v37  ;;  %v521_v43 = vld [vmem:[#allocation5 + $0x60] sm:$0xff]  ;;  %p1439_p8 = scmp.ne.s32.totalorder %s1832_s28, %s1438_s24  ;;  %s1442_s21 = sshll.u32 %s1523_s17, 4  ;;  %s1443_s21 = int_to_ptr.vmem [resolvable:$false] %s1442_s21 }
  0x89   : > { %1174 = vmatpush3.bf16.msra.mxu1 %v1173_v18  ;;  %v522_v44 = vld [vmem:[#allocation5 + $0x68] sm:$0xff]  ;;  %v1167_v45 = vpack.c.bf16 %v430_v41, %v429_v40  ;;  %v1785_v47 = vld [vmem:[%s413_s20] sm:$0xff]  ;;  %v523_v48 = vld [vmem:[#allocation5 + $0x70] sm:$0xff]  ;;  %s1444_s26 = scalar_lea.vmem %s1443_s21, 256  ;;  %p1445_p6 = scmp.lt.s32.totalorder %s1832_s28, %s1443_s21 }
  0x8a   : > { %1153 = vmatpush3.bf16.msra.mxu0 %v1152_v13  ;;  %1175 = vmatprep.subr.bf16.mxu1 %v1520_v0  ;;  %v1188_v46 = vpack.c.bf16 %v522_v44, %v521_v43  ;;  %v524_v49 = vld [vmem:[#allocation5 + $0x78] sm:$0xff]  ;;  %v603_v51 = vld [vmem:[#allocation7] sm:$0xff]  ;;  %v604_v52 = vld [vmem:[#allocation7 + $0x8] sm:$0xff]  ;;  %p1440_p13 = pnand %p1439_p8, %p1910_p11  ;;  %p1446_p9 = scmp.lt.s32.totalorder %s1444_s26, %s1438_s24 }
  0x8b   : > { %1154 = vmatprep.subr.bf16.mxu0 %v1520_v0  ;;  %v1191_v50 = vpack.c.bf16 %v524_v49, %v523_v48  ;;  %v605_v53 = vld [vmem:[#allocation7 + $0x10] sm:$0xff]  ;;  %v1194_v54 = vpack.c.bf16 %v604_v52, %v603_v51  ;;  %v606_v55 = vld [vmem:[#allocation7 + $0x18] sm:$0xff]  ;;  %v607_v57 = vld [vmem:[#allocation7 + $0x20] sm:$0xff] }
  0x8c   : > { %v1197_v56 = vpack.c.bf16 %v606_v55, %v605_v53  ;;  %v608_v58 = vld [vmem:[#allocation7 + $0x28] sm:$0xff]  ;;  %v609_v60 = vld [vmem:[#allocation7 + $0x30] sm:$0xff]  ;;  %v610_v61 = vld [vmem:[#allocation7 + $0x38] sm:$0xff]  ;;  %p1441_p1 = pneg %p1440_p13  ;;  %p1447_p5 = por %p1446_p9, %p1445_p6 }
  0x8d   : > { %1177 = vmatpush3.bf16.msra.mxu1 %v1176_v24  ;;  %v1200_v59 = vpack.c.bf16 %v608_v58, %v607_v57  ;;  %v1203_v62 = vpack.c.bf16 %v610_v61, %v609_v60  ;;  %v611_v63 = vld [vmem:[#allocation7 + $0x40] sm:$0xff]  ;;  %v612_v2 = vld [vmem:[#allocation7 + $0x48] sm:$0xff]  ;;  %v613_v4 = vld [vmem:[#allocation7 + $0x50] sm:$0xff] }
  0x8e   : > { %1156 = vmatpush3.bf16.msra.mxu0 %v1155_v21  ;;  %1178 = vmatprep.subr.bf16.mxu1 %v1520_v0  ;;  %v1206_v3 = vpack.c.bf16 %v612_v2, %v611_v63  ;;  %v614_v5 = vld [vmem:[#allocation7 + $0x58] sm:$0xff]  ;;  %v615_v7 = vld [vmem:[#allocation7 + $0x60] sm:$0xff]  ;;  %v616_v8 = vld [vmem:[#allocation7 + $0x68] sm:$0xff]  ;;  %p1448_p0 = pnand %p1447_p5, %p1441_p1 }
  0x8f   : > { %1157 = vmatprep.subr.bf16.mxu0 %v1520_v0  ;;  %v1209_v6 = vpack.c.bf16 %v614_v5, %v613_v4  ;;  %v1212_v9 = vpack.c.bf16 %v616_v8, %v615_v7  ;;  %v928_v10 = vld [vmem:[%s1875_s3] ss:$0 sm:$0xff]  ;;  %v617_v15 = vld [vmem:[#allocation7 + $0x70] sm:$0xff]  ;;  %v618_v16 = vld [vmem:[#allocation7 + $0x78] sm:$0xff] }
  0x90   : > { %v1215_v17 = vpack.c.bf16 %v618_v16, %v617_v15  ;;  %v697_v18 = vld [vmem:[#allocation8] sm:$0xff]  ;;  %v698_v19 = vld [vmem:[#allocation8 + $0x8] sm:$0xff]  ;;  %v699_v20 = vld [vmem:[#allocation8 + $0x10] sm:$0xff] }
  0x91   : > { %1180 = vmatpush3.bf16.msra.mxu1 %v1179_v30  ;;  %v1218_v21 = vpack.c.bf16 %v698_v19, %v697_v18  ;;  %v700_v22 = vld [vmem:[#allocation8 + $0x18] sm:$0xff]  ;;  %v701_v24 = vld [vmem:[#allocation8 + $0x20] sm:$0xff]  ;;  %v702_v25 = vld [vmem:[#allocation8 + $0x28] sm:$0xff] }
  0x92   : > { %1159 = vmatpush3.bf16.msra.mxu0 %v1158_v27  ;;  %1181 = vmatprep.subr.bf16.mxu1 %v1520_v0  ;;  %v1221_v23 = vpack.c.bf16 %v700_v22, %v699_v20  ;;  %v1224_v26 = vpack.c.bf16 %v702_v25, %v701_v24  ;;  %v704_v27 = vld [vmem:[#allocation8 + $0x38] sm:$0xff]  ;;  %v705_v29 = vld [vmem:[#allocation8 + $0x40] sm:$0xff]  ;;  %v706_v30 = vld [vmem:[#allocation8 + $0x48] sm:$0xff] }
  0x93   : > { %1160 = vmatprep.subr.bf16.mxu0 %v1520_v0  ;;  %v1230_v31 = vpack.c.bf16 %v706_v30, %v705_v29  ;;  %v707_v32 = vld [vmem:[#allocation8 + $0x50] sm:$0xff]  ;;  %v709_v35 = vld [vmem:[#allocation8 + $0x60] sm:$0xff]  ;;  %v712_v44 = vld [vmem:[#allocation8 + $0x78] sm:$0xff] }
  0x94   : > { %v929_v38 = vld [vmem:[%s1877_s5] ss:$0 sm:$0xff]  ;;  %v711_v43 = vld [vmem:[#allocation8 + $0x70] sm:$0xff] }
  0x95   : > { %1183 = vmatpush3.bf16.msra.mxu1 %v1182_v36  ;;  %v710_v36 = vld [vmem:[#allocation8 + $0x68] sm:$0xff]  ;;  %v932_v51 = vld [vmem:[%s1873_s1] ss:$0 sm:$0xff] }
  0x96   : > { %1162 = vmatpush3.bf16.msra.mxu0 %v1161_v33  ;;  %1184 = vmatprep.subr.bf16.mxu1 %v1520_v0  ;;  %v708_v33 = vld [vmem:[#allocation8 + $0x58] sm:$0xff]  ;;  %v1236_v37 = vpack.c.bf16 %v710_v36, %v709_v35  ;;  %v931_v52 = vld [vmem:[%s1881_s9] ss:$0 sm:$0xff]  ;;  %v797_v53 = vmul.f32 %v932_v51, %v1785_v47 }
  0x97   : > { %1163 = vmatprep.subr.bf16.mxu0 %v1520_v0  ;;  %v1233_v34 = vpack.c.bf16 %v708_v33, %v707_v32 }
  0x99   : > { %1186 = vmatpush3.bf16.msra.mxu1 %v1185_v42 }
  0x9a   : > { %1165 = vmatpush3.bf16.msra.mxu0 %v1164_v39  ;;  %1187 = vmatprep.subr.bf16.mxu1 %v1520_v0 }
  0x9b   : > { %1166 = vmatprep.subr.bf16.mxu0 %v1520_v0 }
  0x9d   : > { %1189 = vmatpush3.bf16.msra.mxu1 %v1188_v46  ;;  %v930_v46 = vld [vmem:[%s1879_s7] ss:$0 sm:$0xff] }
  0x9e   : > { %1168 = vmatpush3.bf16.msra.mxu0 %v1167_v45  ;;  %1190 = vmatprep.subr.bf16.mxu1 %v1520_v0  ;;  %v1239_v45 = vpack.c.bf16 %v712_v44, %v711_v43 }
  0x9f   : > { %1193 = vmatprep.subr.bf16.mxu0 %v1520_v0 }
  0xa1   : > { %1038 = vmatmul.mubr.f32.vlgmr.msra.gmra.mrb[0].mxu0 %v1785_v47  ;;  %1192 = vmatpush3.bf16.msra.mxu1 %v1191_v50 }
  0xa2   : > { %1107 = vmatprep.mubr.msk.f32.mxu0 %vm1521_vm0, %v1522_v1  ;;  %1217 = vmatprep.subr.bf16.mxu1 %v1520_v0 }
  0xa3   : > { %1195 = vmatpush3.bf16.msra.mxu0 %v1194_v54 }
  0xa4   : > { %1196 = vmatprep.subr.bf16.mxu0 %v1520_v0 }
  0xa7   : > { %1198 = vmatpush3.bf16.msra.mxu0 %v1197_v56 }
  0xa8   : > { %1199 = vmatprep.subr.bf16.mxu0 %v1520_v0 }
  0xab   : > { %1201 = vmatpush3.bf16.msra.mxu0 %v1200_v59 }
  0xac   : > { %1202 = vmatprep.subr.bf16.mxu0 %v1520_v0 }
  0xaf   : > { %1204 = vmatpush3.bf16.msra.mxu0 %v1203_v62 }
  0xb0   : > { %1205 = vmatprep.subr.bf16.mxu0 %v1520_v0 }
  0xb3   : > { %1207 = vmatpush3.bf16.msra.mxu0 %v1206_v3 }
  0xb4   : > { %1208 = vmatprep.subr.bf16.mxu0 %v1520_v0 }
  0xb7   : > { %1210 = vmatpush3.bf16.msra.mxu0 %v1209_v6 }
  0xb8   : > { %1211 = vmatprep.subr.bf16.mxu0 %v1520_v0 }
  0xbb   : > { %1213 = vmatpush3.bf16.msra.mxu0 %v1212_v9 }
  0xbc   : > { %1214 = vmatprep.subr.bf16.mxu0 %v1520_v0 }
  0xbf   : > { %1216 = vmatpush3.bf16.msra.mxu0 %v1215_v17 }
 0x174   : > { %v504_v11 = vpop.f32.mrb[0].mxu0 }
 0x175   : > { %v505_v12 = vadd.f32 %v928_v10, %v504_v11  ;;  %v1039_v13 = vpop.f32.mrb[1].mxu0 }
 0x177   : > { %v508_v14 = vmax.f32 %v505_v12, 0.0 }
 0x179   : > { %1073 = vmatmul.mubr.f32.vlgmr.msra.gmra.mrb[0].mxu1 %v508_v14 }
 0x17a   : > { %1142 = vmatprep.mubr.msk.f32.mxu1 %vm1521_vm0, %v1522_v1  ;;  %1219 = vmatpush3.bf16.msra.mxu1 %v1218_v21  ;;  %v703_v1 = vld [vmem:[#allocation8 + $0x30] sm:$0xff] }
 0x17b   : > { %1220 = vmatprep.subr.bf16.mxu1 %v1520_v0  ;;  %v1227_v28 = vpack.c.bf16 %v704_v27, %v703_v1 }
 0x17e   : > { %1222 = vmatpush3.bf16.msra.mxu1 %v1221_v23 }
 0x17f   : > { %1223 = vmatprep.subr.bf16.mxu1 %v1520_v0 }
 0x182   : > { %1225 = vmatpush3.bf16.msra.mxu1 %v1224_v26 }
 0x183   : > { %1226 = vmatprep.subr.bf16.mxu1 %v1520_v0 }
 0x186   : > { %1228 = vmatpush3.bf16.msra.mxu1 %v1227_v28 }
 0x187   : > { %1229 = vmatprep.subr.bf16.mxu1 %v1520_v0 }
 0x18a   : > { %1231 = vmatpush3.bf16.msra.mxu1 %v1230_v31 }
 0x18b   : > { %1232 = vmatprep.subr.bf16.mxu1 %v1520_v0 }
 0x18e   : > { %1234 = vmatpush3.bf16.msra.mxu1 %v1233_v34 }
 0x18f   : > { %1235 = vmatprep.subr.bf16.mxu1 %v1520_v0 }
 0x192   : > { %1237 = vmatpush3.bf16.msra.mxu1 %v1236_v37 }
 0x193   : > { %1238 = vmatprep.subr.bf16.mxu1 %v1520_v0 }
 0x196   : > { %1240 = vmatpush3.bf16.msra.mxu1 %v1239_v45 }
 0x24c   : > { %v598_v39 = vpop.f32.mrb[0].mxu1 }
 0x24d   : > { %v599_v40 = vadd.f32 %v929_v38, %v598_v39  ;;  %v1074_v41 = vpop.f32.mrb[1].mxu1 }
 0x24f   : > { %v602_v42 = vmax.f32 %v599_v40, 0.0 }
 0x251   : > { %1108 = vmatmul.mubr.f32.vlgmr.msra.gmra.mrb[2].mxu0 %v602_v42 }
 0x324   : > { %v692_v0 = vpop.f32.mrb[2].mxu0 }
 0x325   : > { %v693_v48 = vadd.f32 %v930_v46, %v692_v0  ;;  %v1109_v49 = vpop.f32.mrb[3].mxu0 }
 0x327   : > { %v696_v50 = vmax.f32 %v693_v48, 0.0 }
 0x329   : > { %1143 = vmatmul.mubr.f32.vlgmr.msra.gmra.mrb[2].mxu1 %v696_v50 }
 0x3fc   : > { %v786_v54 = vpop.f32.mrb[2].mxu1 }
 0x3fd   : > { %v787_v55 = vadd.f32 %v931_v52, %v786_v54  ;;  %v1144_v56 = vpop.f32.mrb[3].mxu1 }
 0x3ff   : > { %v798_v57 = vadd.f32 %v797_v53, %v787_v55 }
 0x401   : > { %799 = vst [vmem:[%s409_s25] sm:$0xff] %v798_v57 }
 0x402   : > { %1451 = shalt.err (!%p1448_p0)
}
 0x403   : > { %s1452_s29 = scalar_lea.hbm %s1830_s16, 128  ;;  %s1456_s27 = scalar_lea.hbm %s1882_s10, 256 }
 0x404   : > { %p1453_p10 = scmp.ne.s32.totalorder %s1830_s16, %s1452_s29  ;;  %p1457_p4 = scmp.lt.u32.totalorder %s1830_s16, %s1882_s10 }
 0x405   : > { %p1458_p12 = scmp.lt.u32.totalorder %s1456_s27, %s1452_s29  ;;  %p1460_p8 = scmp.lt.u32.totalorder %s1452_s29, %s1830_s16 }
 0x406   : > { %p1454_p2 = pnand %p1453_p10, %p1910_p11 }
 0x407   : > { %p1459_p7 = por %p1458_p12, %p1457_p4 }
 0x408   : > { %p1455_p3 = pneg %p1454_p2 }
 0x409   : > { %p1461_p13 = por %p1460_p8, %p1459_p7 }
 0x40b   : > { %p1462_p1 = pnand %p1461_p13, %p1455_p3 }
 0x40d   : > { %1465 = shalt.err (!%p1462_p1)
}
 0x40e   : > { %1257 = dma.vmem_to_hbm [thread:$0]  (%p1910_p11), %s1832_s28, 128, %s1830_s16, %s801_s19  }
 0x40f PF: > { %s1911_s13 = sld [smem:[#allocation17_spill]]  ;;  %s1912_s15 = sld [smem:[#allocation15_spill]] }
 0x410   : > { %s1913_s25 = sld [smem:[#allocation20_spill]] }
 0x415   : > { %p1284_p6 = scmp.ge.s32.totalorder %s1911_s13, 2  ;;  %s826_s18 = sand.u32 1, %s1912_s15  }
 0x416   : > { %p1914_p9 = scmp.ne.s32.totalorder %s1913_s25, 0  ;;  %s827_s20 = scalar_lea.sflag [#allocation4], %s826_s18 }
 0x418   : > { %p1273_p5 = pnand %p1284_p6, %p1914_p9 }
 0x41a   : > { %1495 = dma.done.wait (!%p1273_p5), %s827_s20, 128  }
 0x41b   : > { %1497 = vsyncadd (!%p1273_p5), %s827_s20, 4294967168  ;;  %s1915_s16 = sld [smem:[#allocation18_spill]]  ;;  %s1916_s24 = sld [smem:[#allocation16_spill]] }
 0x41c   : > { %s1917_s15 = sld [smem:[#allocation19_spill]]  ;;  %s1918_s13 = smov %s1504_s14 }
 0x421   : > { %p23_p0 = scmp.ge.s32.totalorder %s1915_s16, 4   ;;  %s1919_s14 = smov %s1916_s24 }
 0x423   :  { %25 = sbr.rel (!%p23_p0) target bundleno = 6 (0x6), region = 112 }
 0x42a   :  { %832 = vsyncpa [#allocation3], 1 }
 0x42b   :  { %834 = vsyncpa [#allocation3 + $0x1], 1 }
 0x42c   :  { %835 = vsyncpa [#allocation6], 1 }
 0x42d   :  { %836 = vsyncpa [#allocation9], 1 }
 0x42e   :  { %837 = vsyncpa [#allocation4], 1 }
 0x42f   :  { %839 = vsyncpa [#allocation4 + $0x1], 1 }

</bundles_post_ra>
